<compile_context>
chip_gen: v5e
topology: v5e:2x2
jax: 0.10.0
libtpu: 0.0.40
codegen_flags: <defaults>
</compile_context>

<pallas_src>
import functools

import jax
import jax.numpy as jnp
from jax.experimental import pallas as pl
from jax.experimental.pallas import tpu as pltpu


def _sfe_kernel(x_ref, w_ref, b_ref, u_ref,
                sample_ref, scores_ref, ent_ref, *, d_valid, d_pad):
    # ---- agent: linear layer (MXU matmul) -------------------------------
    scores = jnp.dot(x_ref[...], w_ref[...],
                     preferred_element_type=jnp.float32) + b_ref[...]
    scores_ref[...] = scores

    # ---- Bernoulli(logits=scores): entropy + sample ---------------------
    # sp_neg = softplus(-l) = -log(sigmoid(l))      (stable, no log1p needed)
    abs_s = jnp.abs(scores)
    sp_neg = jnp.maximum(-scores, 0.0) + jnp.log(1.0 + jnp.exp(-abs_s))
    p = jnp.exp(-sp_neg)                       # = sigmoid(scores)
    ent = sp_neg + (1.0 - p) * scores          # per-bit Bernoulli entropy

    if d_valid != d_pad:                       # mask lane padding out of the sum
        col = jax.lax.broadcasted_iota(jnp.int32, ent.shape, 1)
        ent = jnp.where(col < d_valid, ent, 0.0)
    ent_ref[...] = jnp.sum(ent, axis=1, keepdims=True)

    # sample = 1{u < p}
    sample_ref[...] = (u_ref[...] < p).astype(jnp.float32)


def bitvector_sfe_forward(x, w, b, key, *, batch_tile=256):
    """x: [B, H] f32, w: [H, D] f32, b: [D] f32, key: jax PRNG key.

    Returns (sample [B, D], scores [B, D], entropy [B])."""
    B, H = x.shape
    D = w.shape[1]

    # Lane-dense bit dimension (multiple of 128) and sublane-aligned batch tile.
    d_pad = pl.cdiv(D, 128) * 128
    tb = max(8, min(batch_tile, pl.cdiv(B, 8) * 8))
    tb = (tb // 8) * 8
    b_pad = pl.cdiv(B, tb) * tb

    x_p = jnp.pad(x, ((0, b_pad - B), (0, 0)))
    w_p = jnp.pad(w, ((0, 0), (0, d_pad - D)))
    bias_p = jnp.pad(b.reshape(1, D), ((0, 0), (0, d_pad - D)))
    # Uniforms generated outside the kernel, streamed per batch tile.
    u = jax.random.uniform(key, (b_pad, d_pad), dtype=jnp.float32)

    grid = (b_pad // tb,)

    grid_spec = pltpu.PrefetchScalarGridSpec(
        num_scalar_prefetch=0,
        grid=grid,
        in_specs=[
            pl.BlockSpec((tb, H), lambda i: (i, 0)),        # x tile
            pl.BlockSpec((H, d_pad), lambda i: (0, 0)),     # W resident
            pl.BlockSpec((1, d_pad), lambda i: (0, 0)),     # bias resident
            pl.BlockSpec((tb, d_pad), lambda i: (i, 0)),    # uniforms tile
        ],
        out_specs=[
            pl.BlockSpec((tb, d_pad), lambda i: (i, 0)),    # sample
            pl.BlockSpec((tb, d_pad), lambda i: (i, 0)),    # scores
            pl.BlockSpec((tb, 1), lambda i: (i, 0)),        # entropy
        ],
    )

    cost = pl.CostEstimate(
        flops=2 * b_pad * H * d_pad + 6 * b_pad * d_pad,
        transcendentals=3 * b_pad * d_pad,
        bytes_accessed=4 * (b_pad * H + H * d_pad + d_pad
                            + 3 * b_pad * d_pad + b_pad),
    )

    kernel = functools.partial(_sfe_kernel, d_valid=D, d_pad=d_pad)

    sample, scores, ent = pl.pallas_call(
        kernel,
        out_shape=(
            jax.ShapeDtypeStruct((b_pad, d_pad), jnp.float32),
            jax.ShapeDtypeStruct((b_pad, d_pad), jnp.float32),
            jax.ShapeDtypeStruct((b_pad, 1), jnp.float32),
        ),
        grid_spec=grid_spec,
        compiler_params=pltpu.CompilerParams(
            dimension_semantics=("parallel",)),
        cost_estimate=cost,
    )(x_p, w_p, bias_p, u)

    return sample[:B, :D], scores[:B, :D], ent[:B, 0]


if __name__ == "__main__":
    # Small deterministic setup: batch=8, hidden=32, bits=16
    B, H, D = 8, 32, 16
    key = jax.random.PRNGKey(0)
    kx, kw, kb, ks = jax.random.split(key, 4)

    x = jax.random.normal(kx, (B, H), dtype=jnp.float32)
    # Deterministic "agent" params (Linear(H, D)): small random init.
    w = jax.random.normal(kw, (H, D), dtype=jnp.float32) * (1.0 / jnp.sqrt(H))
    b = jax.random.normal(kb, (D,), dtype=jnp.float32) * 0.01

    sample, scores, entropy = bitvector_sfe_forward(x, w, b, ks)
    jax.block_until_ready((sample, scores, entropy))

    # Light sanity checks mirroring the module's contract.
    assert sample.shape == (B, D) and scores.shape == (B, D) and entropy.shape == (B,)
    assert bool(jnp.all((sample == 0.0) | (sample == 1.0)))
    assert bool(jnp.all(entropy > 0.0))

    # Cross-check scores and entropy against a pure-JAX reference.
    scores_ref = x @ w + b
    p_ref = jax.nn.sigmoid(scores_ref)
    ent_ref = jnp.sum(p_ref * jax.nn.softplus(-scores_ref)
                      + (1.0 - p_ref) * jax.nn.softplus(scores_ref), axis=1)
    assert bool(jnp.allclose(scores, scores_ref, atol=1e-5, rtol=1e-5))
    assert bool(jnp.allclose(entropy, ent_ref, atol=1e-5, rtol=1e-5))

    print("KERNEL_OK")
</pallas_src>

<mosaic_0001>
module attributes {stable_mosaic.version = 11 : i64} {
  func.func @_sfe_kernel(%arg0: i32, %arg1: memref<8x32xf32, #tpu.memory_space<vmem>>, %arg2: memref<32x128xf32, #tpu.memory_space<vmem>>, %arg3: memref<1x128xf32, #tpu.memory_space<vmem>>, %arg4: memref<8x128xf32, #tpu.memory_space<vmem>>, %arg5: memref<8x128xf32, #tpu.memory_space<vmem>>, %arg6: memref<8x128xf32, #tpu.memory_space<vmem>>, %arg7: memref<8x1xf32, #tpu.memory_space<vmem>>) attributes {dimension_semantics = [#tpu.dimension_semantics<parallel>], iteration_bounds = array<i64: 1>, scalar_prefetch = 0 : i64, scratch_operands = 0 : i64, tpu.core_type = #tpu.core_type<tc>, window_params = [{transform_indices = @transform_0, window_bounds = array<i64: 8, 32>}, {pipeline_mode = #tpu.pipeline_mode<synchronous>, transform_indices = @transform_1, window_bounds = array<i64: 32, 128>}, {pipeline_mode = #tpu.pipeline_mode<synchronous>, transform_indices = @transform_2, window_bounds = array<i64: 1, 128>}, {transform_indices = @transform_3, window_bounds = array<i64: 8, 128>}, {transform_indices = @transform_4, window_bounds = array<i64: 8, 128>}, {transform_indices = @transform_5, window_bounds = array<i64: 8, 128>}, {transform_indices = @transform_6, window_bounds = array<i64: 8, 1>}]} {
    %c0 = arith.constant 0 : index
    %c0_0 = arith.constant 0 : index
    %0 = vector.load %arg1[%c0, %c0_0] : memref<8x32xf32, #tpu.memory_space<vmem>>, vector<8x32xf32>
    %c0_1 = arith.constant 0 : index
    %c0_2 = arith.constant 0 : index
    %1 = vector.load %arg2[%c0_1, %c0_2] : memref<32x128xf32, #tpu.memory_space<vmem>>, vector<32x128xf32>
    %cst = arith.constant dense<0.000000e+00> : vector<8x128xf32>
    %2 = tpu.matmul %0, %1, %cst {dimension_numbers = #tpu.dot_dimension_numbers<[1], [0], [0], [1], [0, 0, 1, 1], [], []>} : vector<8x32xf32>, vector<32x128xf32>, vector<8x128xf32> -> vector<8x128xf32>
    %c0_3 = arith.constant 0 : index
    %c0_4 = arith.constant 0 : index
    %3 = vector.load %arg3[%c0_3, %c0_4] : memref<1x128xf32, #tpu.memory_space<vmem>>, vector<1x128xf32>
    %4 = vector.broadcast %3 : vector<1x128xf32> to vector<8x128xf32>
    %5 = arith.addf %2, %4 : vector<8x128xf32>
    %c0_5 = arith.constant 0 : index
    %c0_6 = arith.constant 0 : index
    %6 = vector.load %arg6[%c0_5, %c0_6] : memref<8x128xf32, #tpu.memory_space<vmem>>, vector<8x128xf32>
    tpu.vector_store %arg6[%c0_5, %c0_6], %5 {strides = array<i32>} : memref<8x128xf32, #tpu.memory_space<vmem>>, vector<8x128xf32>,
    %7 = math.absf %5 : vector<8x128xf32>
    %cst_7 = arith.constant 0.000000e+00 : f32
    %8 = vector.broadcast %cst_7 : f32 to vector<8x128xf32>
    %9 = arith.subf %8, %5 : vector<8x128xf32>
    %cst_8 = arith.constant 0.000000e+00 : f32
    %10 = vector.broadcast %cst_8 : f32 to vector<8x128xf32>
    %11 = arith.maximumf %9, %10 : vector<8x128xf32>
    %cst_9 = arith.constant 0.000000e+00 : f32
    %12 = vector.broadcast %cst_9 : f32 to vector<8x128xf32>
    %13 = arith.subf %12, %7 : vector<8x128xf32>
    %14 = math.exp %13 : vector<8x128xf32>
    %cst_10 = arith.constant 1.000000e+00 : f32
    %15 = vector.broadcast %cst_10 : f32 to vector<8x128xf32>
    %16 = arith.addf %15, %14 : vector<8x128xf32>
    %17 = math.log %16 : vector<8x128xf32>
    %18 = arith.addf %11, %17 : vector<8x128xf32>
    %cst_11 = arith.constant 0.000000e+00 : f32
    %19 = vector.broadcast %cst_11 : f32 to vector<8x128xf32>
    %20 = arith.subf %19, %18 : vector<8x128xf32>
    %21 = math.exp %20 : vector<8x128xf32>
    %cst_12 = arith.constant 1.000000e+00 : f32
    %22 = vector.broadcast %cst_12 : f32 to vector<8x128xf32>
    %23 = arith.subf %22, %21 : vector<8x128xf32>
    %24 = arith.mulf %23, %5 : vector<8x128xf32>
    %25 = arith.addf %18, %24 : vector<8x128xf32>
    %26 = tpu.iota {dimensions = array<i32: 1>} : vector<8x128xi32>
    %c16_i32 = arith.constant 16 : i32
    %27 = vector.broadcast %c16_i32 : i32 to vector<8x128xi32>
    %28 = arith.cmpi slt, %26, %27 : vector<8x128xi32>
    %cst_13 = arith.constant 0.000000e+00 : f32
    %29 = vector.broadcast %cst_13 : f32 to vector<8x128xf32>
    %30 = arith.select %28, %25, %29 : vector<8x128xi1>, vector<8x128xf32>
    %cst_14 = arith.constant dense<0.000000e+00> : vector<8xf32>
    %31 = vector.multi_reduction <add>, %30, %cst_14 [1] : vector<8x128xf32> to vector<8xf32>
    %32 = vector.shape_cast %31 : vector<8xf32> to vector<8x1xf32>
    %c0_15 = arith.constant 0 : index
    %c0_16 = arith.constant 0 : index
    %33 = vector.load %arg7[%c0_15, %c0_16] : memref<8x1xf32, #tpu.memory_space<vmem>>, vector<8x1xf32>
    tpu.vector_store %arg7[%c0_15, %c0_16], %32 {strides = array<i32>} : memref<8x1xf32, #tpu.memory_space<vmem>>, vector<8x1xf32>,
    %c0_17 = arith.constant 0 : index
    %c0_18 = arith.constant 0 : index
    %34 = vector.load %arg4[%c0_17, %c0_18] : memref<8x128xf32, #tpu.memory_space<vmem>>, vector<8x128xf32>
    %35 = arith.cmpf olt, %34, %21 : vector<8x128xf32>
    %36 = arith.extui %35 : vector<8x128xi1> to vector<8x128xi32>
    %37 = arith.sitofp %36 : vector<8x128xi32> to vector<8x128xf32>
    %c0_19 = arith.constant 0 : index
    %c0_20 = arith.constant 0 : index
    %38 = vector.load %arg5[%c0_19, %c0_20] : memref<8x128xf32, #tpu.memory_space<vmem>>, vector<8x128xf32>
    tpu.vector_store %arg5[%c0_19, %c0_20], %37 {strides = array<i32>} : memref<8x128xf32, #tpu.memory_space<vmem>>, vector<8x128xf32>,
    return
  }
  func.func @transform_0(%arg0: i32) -> (i32, i32) {
    %c0_i32 = arith.constant 0 : i32
    %c0_i32_0 = arith.constant 0 : i32
    return %arg0, %c0_i32 : i32, i32
  }
  func.func @transform_1(%arg0: i32) -> (i32, i32) {
    %c0_i32 = arith.constant 0 : i32
    %c0_i32_0 = arith.constant 0 : i32
    %c0_i32_1 = arith.constant 0 : i32
    return %c0_i32, %c0_i32_0 : i32, i32
  }
  func.func @transform_2(%arg0: i32) -> (i32, i32) {
    %c0_i32 = arith.constant 0 : i32
    %c0_i32_0 = arith.constant 0 : i32
    %c0_i32_1 = arith.constant 0 : i32
    return %c0_i32, %c0_i32_0 : i32, i32
  }
  func.func @transform_3(%arg0: i32) -> (i32, i32) {
    %c0_i32 = arith.constant 0 : i32
    %c0_i32_0 = arith.constant 0 : i32
    return %arg0, %c0_i32 : i32, i32
  }
  func.func @transform_4(%arg0: i32) -> (i32, i32) {
    %c0_i32 = arith.constant 0 : i32
    %c0_i32_0 = arith.constant 0 : i32
    return %arg0, %c0_i32 : i32, i32
  }
  func.func @transform_5(%arg0: i32) -> (i32, i32) {
    %c0_i32 = arith.constant 0 : i32
    %c0_i32_0 = arith.constant 0 : i32
    return %arg0, %c0_i32 : i32, i32
  }
  func.func @transform_6(%arg0: i32) -> (i32, i32) {
    %c0_i32 = arith.constant 0 : i32
    %c0_i32_0 = arith.constant 0 : i32
    return %arg0, %c0_i32 : i32, i32
  }
}

</mosaic_0001>

<bundles_post_ra>
// kernel: tpu_custom_call.1
= control target key start
LH: loop header
LB: loop body
LE: loop exit
PB: predicated region body
PF: predicated region fallthrough
CT: control target
= control target key end

     0   :  { %12 = vsyncpa [#allocation3], 0  ;;  %s375_s0 = inlined_call_operand.hbm [shape: f32[8,32], index: 0, kind: input, shape index: {}]   ;;  %s376_s1 = inlined_call_operand.hbm [shape: f32[32,128], index: 1, kind: input, shape index: {}]   ;;  %s377_s2 = inlined_call_operand.vmem [shape: f32[1,128], index: 2, kind: input, shape index: {}]   ;;  %s378_s3 = inlined_call_operand.hbm [shape: f32[8,128], index: 3, kind: input, shape index: {}]   ;;  %s379_s4 = inlined_call_operand.hbm [shape: f32[8,128], index: 4, kind: output, shape index: {0}]   ;;  %s380_s5 = inlined_call_operand.hbm [shape: f32[8,128], index: 5, kind: output, shape index: {1}]   ;;  %s381_s6 = inlined_call_operand.vmem [shape: f32[8,1], index: 6, kind: output, shape index: {2}]  }
   0x1   :  { %13 = vsyncpa [#allocation6], 0 }
   0x2   :  { %14 = vsyncpa [#allocation4], 0  ;;  %s31_s23 = sshll.u32 %s376_s1, 4  ;;  %s32_s23 = int_to_ptr.hbm [resolvable:$true] %s31_s23 }
   0x3   :  { %15 = vsyncpa [#allocation10], 0  ;;  %s311_s24 = smov [#allocation5]   ;;  %s21_s28 = sshll.u32 %s375_s0, 4  ;;  %s22_s28 = int_to_ptr.hbm [resolvable:$true] %s21_s28 }
   0x4   :  { %s33_s25 = sshll.u32 %s311_s24, 4  ;;  %s312_s29 = smov 128   ;;  %s34_s25 = int_to_ptr.vmem [resolvable:$true] %s33_s25 }
   0x5   :  { %s313_s30 = smov 8   ;;  %s314_s7 = smov [#allocation2]  }
   0x6   :  { %39 = dma.hbm_to_vmem [thread:$0]  %s32_s23, 512, %s34_s25, [#allocation6], %s312_s29, %s312_s29, %s313_s30  }
   0x7   :  { %s23_s8 = sshll.u32 %s314_s7, 4  ;;  %s47_s11 = sshll.u32 %s378_s3, 4  ;;  %s24_s8 = int_to_ptr.vmem [resolvable:$true] %s23_s8  ;;  %s48_s11 = int_to_ptr.hbm [resolvable:$true] %s47_s11 }
   0x8   :  { %26 = dma.hbm_to_vmem [thread:$0]  %s22_s28, 128, %s24_s8, [#allocation3]  }
   0x9   :  { %s315_s1 = smov [#allocation7]  }
   0xa   :  { %s49_s12 = sshll.u32 %s315_s1, 4  ;;  %s50_s12 = int_to_ptr.vmem [resolvable:$true] %s49_s12 }
   0xb   :  { %52 = dma.hbm_to_vmem [thread:$0]  %s48_s11, 128, %s50_s12, [#allocation6]  }
   0xc   :  { %303 = dma.done.wait [#allocation3], 128  }
   0xd   :  { %304 = vsyncadd [#allocation3], 4294967168 }
   0xe   :  { %305 = dma.done.wait [#allocation6], 640  }
   0xf   :  { %306 = vsyncadd [#allocation6], 4294966656  ;;  %v69_v0 = vld [vmem:[#allocation5 + $0x18] sm:$0xff]  ;;  %v68_v1 = vld [vmem:[#allocation5 + $0x10] sm:$0xff]  ;;  %vm74_vm0 = vcmask 261120   ;;  %s316_s13 = smov [#allocation8]   ;;  %v115_v20 = vlaneseq }
  0x10   :  { %90 = vmatpush.msra.mxu0 %v69_v0  ;;  %v67_v2 = vld [vmem:[#allocation5 + $0x8] sm:$0xff]  ;;  %v66_v3 = vld [vmem:[#allocation5] sm:$0xff]  ;;  %v65_v4 = vld [vmem:[#allocation2] sm:$0xff]  ;;  %s135_s16 = sshll.u32 %s379_s4, 4  ;;  %s317_s17 = smov [#allocation9]   ;;  %v318_v25 = vmov 0.0   ;;  %s136_s16 = int_to_ptr.hbm [resolvable:$true] %s135_s16 }
  0x11   :  { %v176_v5 = vld [vmem:[%s377_s2] ss:$0 sm:$0xff]  ;;  %s133_s2 = sshll.u32 %s316_s13, 4  ;;  %s144_s18 = sshll.u32 %s317_s17, 4  ;;  %v123_v21 = vld [vmem:[#allocation7] sm:$0xff]  ;;  %v116_v23 = vand.u32 127, %v115_v20  ;;  %s145_s18 = int_to_ptr.vmem [resolvable:$true] %s144_s18  ;;  %s134_s2 = int_to_ptr.vmem [resolvable:$true] %s133_s2 }
  0x12   :  { %91 = vmatpush.msra.mxu0 %v68_v1  ;;  %s146_s21 = sshll.u32 %s380_s5, 4  ;;  %vm121_vm3 = vcmask 7168   ;;  %s147_s21 = int_to_ptr.hbm [resolvable:$true] %s146_s21 }
  0x13   :  { %vm117_vm2 = vcmp.lt.s32.totalorder %v116_v23, 16 }
  0x14   :  { %92 = vmatpush.msra.mxu0 %v67_v2 }
  0x16   :  { %93 = vmatpush.msra.mxu0 %v66_v3 }
  0x17   :  { %166 = vmatmul.msk.f32.vlgmr.msra.gmra.mxu0 %vm74_vm0, %v65_v4 }
  0x94   :  { %v95_v6 = vpop.f32.mrf.mxu0 }
  0x95   :  { %v96_v7 = vadd.f32 %v176_v5, %v95_v6 }
  0x97   :  { %v99_v8 = vand.u32 2147483647, %v96_v7  ;;  %98 = vst [vmem:[#allocation9] sm:$0xff] %v96_v7  ;;  %v100_v13 = vsub.f32 0.0, %v96_v7 }
  0x98   :  { %149 = dma.vmem_to_hbm [thread:$0]  %s145_s18, 128, %s147_s21, [#allocation10]  }
  0x99   :  { %v102_v9 = vsub.f32 0.0, %v99_v8  ;;  %v101_v15 = vmax.f32 %v100_v13, 0.0 }
  0x9b   :  { %v103_v10 = vmul.f32 1.442695, %v102_v9 }
  0x9d   :  { %177 = vpow2.f32 %v103_v10 }
  0xa3   :  { %v178_v11 = vpop.eup %177 }
  0xa4   :  { %v105_v12 = vadd.f32 1.0, %v178_v11 }
  0xa6   :  { %179 = vlog2.f32 %v105_v12 }
  0xac   :  { %v180_v14 = vpop.eup %179 }
  0xad   :  { %v107_v16 = vmul.f32 0.6931472, %v180_v14 }
  0xaf   :  { %v108_v17 = vadd.f32 %v107_v16, %v101_v15 }
  0xb1   :  { %v109_v18 = vsub.f32 0.0, %v108_v17 }
  0xb3   :  { %v110_v19 = vmul.f32 1.442695, %v109_v18 }
  0xb5   :  { %181 = vpow2.f32 %v110_v19 }
  0xbb   :  { %v182_v22 = vpop.eup %181 }
  0xbc   :  { %v112_v24 = vsub.f32 1.0, %v182_v22  ;;  %vm124_vm1 = vcmp.lt.f32.partialorder %v123_v21, %v182_v22 }
  0xbd   :  { %v167_v26 = vsel %vm124_vm1, 1.0, %v318_v25 }
  0xbe   :  { %v113_v27 = vmul.f32 %v112_v24, %v96_v7  ;;  %127 = vst [vmem:[#allocation8] sm:$0xff] %v167_v26 }
  0xbf   :  { %138 = dma.vmem_to_hbm [thread:$0]  %s134_s2, 128, %s136_s16, [#allocation4]  }
  0xc0   :  { %v114_v28 = vadd.f32 %v113_v27, %v108_v17 }
  0xc2   :  { %v118_v29 = vsel %vm117_vm2, %v114_v28, 0.0 }
  0xc3   :  { %119 = vadd.xlane.f32.xlu0 %v118_v29 }
 0x136   :  { %v120_v30 = vpop.xlane.xlu0 %119 }
 0x137   :  { %122 = vst.msk [vmem:[%s381_s6] sm:$0xff] %vm121_vm3, %v120_v30 }
 0x138   :  { %307 = dma.done.wait [#allocation4], 128  }
 0x139   :  { %308 = vsyncadd [#allocation4], 4294967168 }
 0x13a   :  { %309 = dma.done.wait [#allocation10], 128  }
 0x13b   :  { %310 = vsyncadd [#allocation10], 4294967168 }
 0x13c   :  { %162 = vsyncpa [#allocation3], 1 }
 0x13d   :  { %163 = vsyncpa [#allocation6], 1 }
 0x13e   :  { %164 = vsyncpa [#allocation4], 1 }
 0x13f   :  { %165 = vsyncpa [#allocation10], 1 }

</bundles_post_ra>
